<compile_context>
chip_gen: v5e
topology: v5e:2x2
jax: 0.10.0
libtpu: 0.0.40
codegen_flags: <defaults>
</compile_context>

<pallas_src>
import functools

import numpy as np
import jax
import jax.numpy as jnp
from jax.experimental import pallas as pl
from jax.experimental.pallas import tpu as pltpu


# ----------------------------------------------------------------------------
# Deterministic re-implementation of librosa.filters.mel (Slaney scale/norm),
# so we do not need librosa or any checkpoint file.
# ----------------------------------------------------------------------------
def _hz_to_mel(freq):
    freq = np.asanyarray(freq, dtype=np.float64)
    f_min = 0.0
    f_sp = 200.0 / 3
    mels = (freq - f_min) / f_sp
    min_log_hz = 1000.0
    min_log_mel = (min_log_hz - f_min) / f_sp
    logstep = np.log(6.4) / 27.0
    mels = np.where(
        freq >= min_log_hz,
        min_log_mel + np.log(np.maximum(freq, min_log_hz) / min_log_hz) / logstep,
        mels,
    )
    return mels


def _mel_to_hz(mels):
    mels = np.asanyarray(mels, dtype=np.float64)
    f_min = 0.0
    f_sp = 200.0 / 3
    freqs = f_min + f_sp * mels
    min_log_hz = 1000.0
    min_log_mel = (min_log_hz - f_min) / f_sp
    logstep = np.log(6.4) / 27.0
    freqs = np.where(
        mels >= min_log_mel,
        min_log_hz * np.exp(logstep * (mels - min_log_mel)),
        freqs,
    )
    return freqs


def mel_filterbank(sr=16000, n_fft=512, n_mels=80, fmin=0.0, fmax=-1.0):
    """Returns H of shape (n_freq, n_mels) = librosa.filters.mel(...).T"""
    if fmax <= 0:
        fmax = sr / 2.0
    n_freq = 1 + n_fft // 2
    fftfreqs = np.linspace(0.0, sr / 2.0, n_freq)
    min_mel = _hz_to_mel(fmin)
    max_mel = _hz_to_mel(fmax)
    mels = np.linspace(min_mel, max_mel, n_mels + 2)
    mel_f = _mel_to_hz(mels)
    fdiff = np.diff(mel_f)
    ramps = mel_f[:, None] - fftfreqs[None, :]
    weights = np.zeros((n_mels, n_freq), dtype=np.float64)
    for i in range(n_mels):
        lower = -ramps[i] / fdiff[i]
        upper = ramps[i + 2] / fdiff[i + 1]
        weights[i] = np.maximum(0.0, np.minimum(lower, upper))
    # Slaney-style normalization (librosa default norm='slaney')
    enorm = 2.0 / (mel_f[2 : n_mels + 2] - mel_f[:n_mels])
    weights *= enorm[:, None]
    return np.ascontiguousarray(weights.T).astype(np.float32)  # (n_freq, n_mels)


# ----------------------------------------------------------------------------
# Pallas kernel: out = maximum(x @ H, mel_floor)
# ----------------------------------------------------------------------------
def _mel_fbank_kernel(x_ref, h_ref, o_ref, *, mel_floor):
    y = jnp.dot(x_ref[...], h_ref[...], preferred_element_type=jnp.float32)
    o_ref[...] = jnp.maximum(y, jnp.float32(mel_floor))


def _round_up(a, b):
    return ((a + b - 1) // b) * b


def mel_fbank(x, H, mel_floor=1e-10, tm=1024):
    """x: (B, T, N) float32, H: (N, C) float32 -> (B, T, C) float32."""
    B, T, N = x.shape
    Nh, C = H.shape
    assert N == Nh
    M = B * T
    x2 = x.reshape(M, N).astype(jnp.float32)
    H = H.astype(jnp.float32)

    # M-axis tile: big (1024) to approach the HBM roofline; for small inputs
    # use the whole M rounded up to a sublane multiple of 8.  K=N and C are
    # kept as full blocks (block dim == full array dim satisfies (8,128)).
    tm = min(int(tm), _round_up(M, 8))
    assert tm % 8 == 0
    grid_m = pl.cdiv(M, tm)  # partial last block is masked by Pallas

    cost = pl.CostEstimate(
        flops=2 * M * N * C,
        transcendentals=0,
        bytes_accessed=4 * (M * N + M * C + N * C),
    )

    out2 = pl.pallas_call(
        functools.partial(_mel_fbank_kernel, mel_floor=float(mel_floor)),
        out_shape=jax.ShapeDtypeStruct((M, C), jnp.float32),
        grid_spec=pltpu.PrefetchScalarGridSpec(
            num_scalar_prefetch=0,
            grid=(grid_m,),
            in_specs=[
                pl.BlockSpec((tm, N), lambda i: (i, 0)),
                # constant block index -> H (~82 KB) stays resident in VMEM
                pl.BlockSpec((N, C), lambda i: (0, 0)),
            ],
            out_specs=pl.BlockSpec((tm, C), lambda i: (i, 0)),
        ),
        compiler_params=pltpu.CompilerParams(
            dimension_semantics=("parallel",)
        ),
        cost_estimate=cost,
    )(x2, H)
    return out2.reshape(B, T, C)


if __name__ == "__main__":
    # Module defaults: n_filterbank=80, n_fft=512 -> N = 257 freq bins.
    n_filterbank, n_fft, sr = 80, 512, 16000
    mel_floor = 1e-10

    H_np = mel_filterbank(sr=sr, n_fft=n_fft, n_mels=n_filterbank, fmin=0.0, fmax=-1.0)
    H = jnp.asarray(H_np)                       # (257, 80)

    key = jax.random.PRNGKey(0)

    # --- small shape consistent with the module: batch=2, seq=8 ---
    B, T, N = 2, 8, n_fft // 2 + 1
    x = jax.random.uniform(key, (B, T, N), dtype=jnp.float32)  # power-spectrum-like
    out = mel_fbank(x, H, mel_floor)
    out = jax.block_until_ready(out)
    ref = jnp.maximum(x @ H, jnp.float32(mel_floor))
    assert out.shape == (B, T, n_filterbank)
    np.testing.assert_allclose(np.asarray(out), np.asarray(ref), rtol=1e-5, atol=1e-6)

    # --- secondary check: M not a multiple of tm (exercises cdiv/masked path) ---
    B2, T2 = 2, 531                              # M = 1062 -> grid of 2, partial block
    x2 = jax.random.uniform(jax.random.PRNGKey(1), (B2, T2, N), dtype=jnp.float32)
    out2 = jax.block_until_ready(mel_fbank(x2, H, mel_floor))
    ref2 = jnp.maximum(x2 @ H, jnp.float32(mel_floor))
    np.testing.assert_allclose(np.asarray(out2), np.asarray(ref2), rtol=1e-5, atol=1e-6)

    print("KERNEL_OK")
</pallas_src>

<mosaic_0001>
module attributes {stable_mosaic.version = 11 : i64} {
  func.func @_mel_fbank_kernel(%arg0: i32, %arg1: memref<16x257xf32, #tpu.memory_space<vmem>>, %arg2: memref<257x80xf32, #tpu.memory_space<vmem>>, %arg3: memref<16x80xf32, #tpu.memory_space<vmem>>) attributes {dimension_semantics = [#tpu.dimension_semantics<parallel>], iteration_bounds = array<i64: 1>, scalar_prefetch = 0 : i64, scratch_operands = 0 : i64, tpu.core_type = #tpu.core_type<tc>, window_params = [{transform_indices = @transform_0, window_bounds = array<i64: 16, 257>}, {pipeline_mode = #tpu.pipeline_mode<synchronous>, transform_indices = @transform_1, window_bounds = array<i64: 257, 80>}, {transform_indices = @transform_2, window_bounds = array<i64: 16, 80>}]} {
    %c0 = arith.constant 0 : index
    %c0_0 = arith.constant 0 : index
    %0 = vector.load %arg1[%c0, %c0_0] : memref<16x257xf32, #tpu.memory_space<vmem>>, vector<16x257xf32>
    %c0_1 = arith.constant 0 : index
    %c0_2 = arith.constant 0 : index
    %1 = vector.load %arg2[%c0_1, %c0_2] : memref<257x80xf32, #tpu.memory_space<vmem>>, vector<257x80xf32>
    %cst = arith.constant dense<0.000000e+00> : vector<16x80xf32>
    %2 = tpu.matmul %0, %1, %cst {dimension_numbers = #tpu.dot_dimension_numbers<[1], [0], [0], [1], [0, 0, 1, 1], [], []>} : vector<16x257xf32>, vector<257x80xf32>, vector<16x80xf32> -> vector<16x80xf32>
    %cst_3 = arith.constant 1.000000e-10 : f32
    %3 = vector.broadcast %cst_3 : f32 to vector<16x80xf32>
    %4 = arith.maximumf %2, %3 : vector<16x80xf32>
    %c0_4 = arith.constant 0 : index
    %c0_5 = arith.constant 0 : index
    %5 = vector.load %arg3[%c0_4, %c0_5] : memref<16x80xf32, #tpu.memory_space<vmem>>, vector<16x80xf32>
    tpu.vector_store %arg3[%c0_4, %c0_5], %4 {strides = array<i32>} : memref<16x80xf32, #tpu.memory_space<vmem>>, vector<16x80xf32>,
    return
  }
  func.func @transform_0(%arg0: i32) -> (i32, i32) {
    %c0_i32 = arith.constant 0 : i32
    %c0_i32_0 = arith.constant 0 : i32
    return %arg0, %c0_i32 : i32, i32
  }
  func.func @transform_1(%arg0: i32) -> (i32, i32) {
    %c0_i32 = arith.constant 0 : i32
    %c0_i32_0 = arith.constant 0 : i32
    %c0_i32_1 = arith.constant 0 : i32
    return %c0_i32, %c0_i32_0 : i32, i32
  }
  func.func @transform_2(%arg0: i32) -> (i32, i32) {
    %c0_i32 = arith.constant 0 : i32
    %c0_i32_0 = arith.constant 0 : i32
    return %arg0, %c0_i32 : i32, i32
  }
}

</mosaic_0001>

<bundles_post_ra>
// kernel: tpu_custom_call.1
= control target key start
LH: loop header
LB: loop body
LE: loop exit
PB: predicated region body
PF: predicated region fallthrough
CT: control target
= control target key end

     0   :  { %vm58_vm0 = vcmask 1040384   ;;  %vm51_vm1 = vcmask 7168   ;;  %s342_s0 = inlined_call_operand.vmem [shape: f32[16,257], index: 0, kind: input, shape index: {}]   ;;  %s343_s1 = inlined_call_operand.vmem [shape: f32[257,80], index: 1, kind: input, shape index: {}]   ;;  %s344_s2 = inlined_call_operand.hbm [shape: f32[16,80], index: 2, kind: output, shape index: {}]  }
   0x1   :  { %v33_v0 = vld [vmem:[%s343_s1 + $0x78] sm:$0xff]  ;;  %v32_v2 = vld [vmem:[%s343_s1 + $0x70] sm:$0xff]  ;;  %v31_v4 = vld [vmem:[%s343_s1 + $0x68] sm:$0xff] }
   0x2   :  { %v49_v1 = vld [vmem:[%s343_s1 + $0xf8] sm:$0xff]  ;;  %62 = vmatpush.msra.mxu0 %v33_v0  ;;  %v48_v3 = vld [vmem:[%s343_s1 + $0xf0] sm:$0xff]  ;;  %157 = vmatpush.msra.mxu3 %v33_v0  ;;  %v47_v5 = vld [vmem:[%s343_s1 + $0xe8] sm:$0xff] }
   0x3   :  { %85 = vmatpush.msra.mxu1 %v49_v1  ;;  %v30_v6 = vld [vmem:[%s343_s1 + $0x60] sm:$0xff]  ;;  %v29_v8 = vld [vmem:[%s343_s1 + $0x58] sm:$0xff]  ;;  %v28_v10 = vld [vmem:[%s343_s1 + $0x50] sm:$0xff] }
   0x4   :  { %63 = vmatpush.msra.mxu0 %v32_v2  ;;  %158 = vmatpush.msra.mxu3 %v32_v2  ;;  %v46_v7 = vld [vmem:[%s343_s1 + $0xe0] sm:$0xff]  ;;  %v45_v9 = vld [vmem:[%s343_s1 + $0xd8] sm:$0xff]  ;;  %v44_v11 = vld [vmem:[%s343_s1 + $0xd0] sm:$0xff] }
   0x5   :  { %86 = vmatpush.msra.mxu1 %v48_v3  ;;  %v50_v12 = vld [vmem:[%s343_s1 + $0x100] sm:$0x1]  ;;  %v14_v13 = vld [vmem:[%s342_s0 + $0x10] sm:$0xff]  ;;  %v27_v14 = vld [vmem:[%s343_s1 + $0x48] sm:$0xff] }
   0x6   :  { %64 = vmatpush.msra.mxu0 %v31_v4  ;;  %159 = vmatpush.msra.mxu3 %v31_v4  ;;  %v43_v15 = vld [vmem:[%s343_s1 + $0xc8] sm:$0xff]  ;;  %v26_v16 = vld [vmem:[%s343_s1 + $0x40] sm:$0xff] }
   0x7   :  { %87 = vmatpush.msra.mxu1 %v47_v5  ;;  %154 = vmatpush.msk.msra.mxu2 %vm58_vm0, %v50_v12  ;;  %v42_v17 = vld [vmem:[%s343_s1 + $0xc0] sm:$0xff] }
   0x8   :  { %65 = vmatpush.msra.mxu0 %v30_v6  ;;  %160 = vmatpush.msra.mxu3 %v30_v6 }
   0x9   :  { %88 = vmatpush.msra.mxu1 %v46_v7  ;;  %155 = vmatmul.msk.f32.vlgmr.msra.gmra.mxu2 %vm51_vm1, %v14_v13 }
   0xa   :  { %66 = vmatpush.msra.mxu0 %v29_v8  ;;  %161 = vmatpush.msra.mxu3 %v29_v8 }
   0xb   :  { %89 = vmatpush.msra.mxu1 %v45_v9 }
   0xc   :  { %67 = vmatpush.msra.mxu0 %v28_v10  ;;  %162 = vmatpush.msra.mxu3 %v28_v10 }
   0xd   :  { %90 = vmatpush.msra.mxu1 %v44_v11 }
   0xe   :  { %68 = vmatpush.msra.mxu0 %v27_v14 }
   0xf   :  { %91 = vmatpush.msra.mxu1 %v43_v15 }
  0x10   :  { %7 = vsyncpa [#allocation3], 0  ;;  %163 = vmatpush.msra.mxu3 %v27_v14  ;;  %v25_v18 = vld [vmem:[%s343_s1 + $0x38] sm:$0xff]  ;;  %69 = vmatpush.msra.mxu0 %v26_v16  ;;  %v24_v20 = vld [vmem:[%s343_s1 + $0x30] sm:$0xff]  ;;  %vm133_vm2 = vcmask 654336   ;;  %s202_s30 = smov [#allocation2]  }
  0x11   :  { %v41_v19 = vld [vmem:[%s343_s1 + $0xb8] sm:$0xff]  ;;  %92 = vmatpush.msra.mxu1 %v42_v17  ;;  %v40_v21 = vld [vmem:[%s343_s1 + $0xb0] sm:$0xff]  ;;  %v17_v22 = vld [vmem:[%s342_s0 + $0x28] sm:$0xff]  ;;  %s140_s3 = sshll.u32 %s202_s30, 4  ;;  %s142_s6 = sshll.u32 %s344_s2, 4  ;;  %s141_s3 = int_to_ptr.vmem [resolvable:$true] %s140_s3  ;;  %s143_s6 = int_to_ptr.hbm [resolvable:$true] %s142_s6 }
  0x12   :  { %164 = vmatpush.msra.mxu3 %v26_v16  ;;  %70 = vmatpush.msra.mxu0 %v25_v18  ;;  %v23_v23 = vld [vmem:[%s343_s1 + $0x28] sm:$0xff]  ;;  %v22_v25 = vld [vmem:[%s343_s1 + $0x20] sm:$0xff]  ;;  %v21_v27 = vld [vmem:[%s343_s1 + $0x18] sm:$0xff]  ;;  %s204_s7 = smov 8  }
  0x13   :  { %93 = vmatpush.msra.mxu1 %v41_v19  ;;  %v39_v24 = vld [vmem:[%s343_s1 + $0xa8] sm:$0xff]  ;;  %v38_v26 = vld [vmem:[%s343_s1 + $0xa0] sm:$0xff]  ;;  %156 = vmatmul.msk.f32.gmra.mxu2 %vm51_vm1, %v17_v22  ;;  %v37_v28 = vld [vmem:[%s343_s1 + $0x98] sm:$0xff] }
  0x14   :  { %165 = vmatpush.msra.mxu3 %v25_v18  ;;  %71 = vmatpush.msra.mxu0 %v24_v20  ;;  %v20_v29 = vld [vmem:[%s343_s1 + $0x10] sm:$0xff]  ;;  %v19_v31 = vld [vmem:[%s343_s1 + $0x8] sm:$0xff]  ;;  %v18_v33 = vld [vmem:[%s343_s1] sm:$0xff] }
  0x15   :  { %94 = vmatpush.msra.mxu1 %v40_v21  ;;  %v36_v30 = vld [vmem:[%s343_s1 + $0x90] sm:$0xff]  ;;  %v35_v32 = vld [vmem:[%s343_s1 + $0x88] sm:$0xff]  ;;  %v34_v34 = vld [vmem:[%s343_s1 + $0x80] sm:$0xff] }
  0x16   :  { %166 = vmatpush.msra.mxu3 %v24_v20  ;;  %72 = vmatpush.msra.mxu0 %v23_v23  ;;  %v12_v35 = vld [vmem:[%s342_s0] sm:$0xff]  ;;  %v13_v36 = vld [vmem:[%s342_s0 + $0x8] sm:$0xff]  ;;  %v15_v37 = vld [vmem:[%s342_s0 + $0x18] sm:$0xff] }
  0x17   :  { %95 = vmatpush.msra.mxu1 %v39_v24  ;;  %v16_v38 = vld [vmem:[%s342_s0 + $0x20] sm:$0xff]  ;;  %s203_s0 = smov 128  }
  0x18   :  { %167 = vmatpush.msra.mxu3 %v23_v23  ;;  %73 = vmatpush.msra.mxu0 %v22_v25 }
  0x19   :  { %96 = vmatpush.msra.mxu1 %v38_v26 }
  0x1a   :  { %168 = vmatpush.msra.mxu3 %v22_v25  ;;  %74 = vmatpush.msra.mxu0 %v21_v27 }
  0x1b   :  { %97 = vmatpush.msra.mxu1 %v37_v28 }
  0x1c   :  { %169 = vmatpush.msra.mxu3 %v21_v27  ;;  %75 = vmatpush.msra.mxu0 %v20_v29 }
  0x1d   :  { %98 = vmatpush.msra.mxu1 %v36_v30 }
  0x1e   :  { %170 = vmatpush.msra.mxu3 %v20_v29  ;;  %76 = vmatpush.msra.mxu0 %v19_v31 }
  0x1f   :  { %99 = vmatpush.msra.mxu1 %v35_v32 }
  0x20   :  { %171 = vmatpush.msra.mxu3 %v19_v31  ;;  %77 = vmatpush.msra.mxu0 %v18_v33 }
  0x21   :  { %100 = vmatpush.msra.mxu1 %v34_v34  ;;  %78 = vmatmul.f32.vlgmr.msra.gmra.mxu0 %v12_v35 }
  0x22   :  { %101 = vmatmul.f32.vlgmr.msra.gmra.mxu1 %v13_v36  ;;  %172 = vmatpush.msra.mxu3 %v18_v33 }
  0x23   :  { %81 = vmatmul.f32.vlgmr.msra.gmra.mxu3 %v15_v37 }
  0x2a   :  { %104 = vmatmul.f32.gmra.mxu1 %v16_v38 }
  0x8c   :  { %v125_v39 = vpop.f32.mrf.mxu2 }
  0x96   :  { %v128_v45 = vpop.f32.mrf.mxu2 }
  0x9e   :  { %v79_v40 = vpop.f32.mrf.mxu0 }
  0x9f   :  { %v102_v41 = vpop.f32.mrf.mxu1 }
  0xa0   :  { %v103_v42 = vadd.f32 %v102_v41, %v79_v40 }
  0xa2   :  { %v126_v43 = vadd.f32 %v125_v39, %v103_v42 }
  0xa4   :  { %v131_v44 = vmax.f32 %v126_v43, 1e-10 }
  0xa6   :  { %134 = vst.msk [vmem:[#allocation2] sm:$0xff] %vm133_vm2, %v131_v44  ;;  %v82_v46 = vpop.f32.mrf.mxu3 }
  0xa7   :  { %v105_v47 = vpop.f32.mrf.mxu1 }
  0xa8   :  { %v106_v48 = vadd.f32 %v105_v47, %v82_v46 }
  0xaa   :  { %v129_v49 = vadd.f32 %v128_v45, %v106_v48 }
  0xac   :  { %v132_v50 = vmax.f32 %v129_v49, 1e-10 }
  0xae   :  { %135 = vst.msk [vmem:[#allocation2 + $0x8] sm:$0xff] %vm133_vm2, %v132_v50 }
  0xaf   :  { %148 = dma.vmem_to_hbm [thread:$0]  %s141_s3, 256, %s143_s6, [#allocation3], %s203_s0, %s203_s0, %s204_s7  }
  0xb0   :  { %200 = dma.done.wait [#allocation3], 256  }
  0xb1   :  { %201 = vsyncadd [#allocation3], 4294967040 }
  0xb2   :  { %153 = vsyncpa [#allocation3], 1 }

</bundles_post_ra>
